<compile_context>
chip_gen: v7x
topology: tpu7x:2x2x1
jax: 0.10.0
libtpu: 0.0.40
codegen_flags: <defaults>
</compile_context>

<pallas_src>
import jax
import jax.numpy as jnp
from jax.experimental import pallas as pl
from jax.experimental.pallas import tpu as pltpu


def _round_up(x, m):
    return ((x + m - 1) // m) * m


def _cdiv(a, b):
    return -(-a // b)


def _make_tv_kernel(H, W, tbc, BC, ragged):
    S = H * W
    groups = tbc // 8

    def kernel(x_ref, h_ref, w_ref, h_acc, w_acc):
        chunk = pl.program_id(0)
        step = pl.program_id(1)    # reduction axis; must stay innermost

        @pl.when(step == 0)
        def _init():
            h_acc[...] = jnp.zeros_like(h_acc)
            w_acc[...] = jnp.zeros_like(w_acc)

        x = x_ref[...].astype(jnp.float32)                     # (tbc, S)

        # Neighbour values via XLU lane rotation (jnp.roll semantics):
        #   roll(x, S-W)[i] == x[(i+W) % S]   (vertical neighbour)
        #   roll(x, S-1)[i] == x[(i+1) % S]   (horizontal neighbour)
        xh = pltpu.roll(x, shift=S - W, axis=1)
        xw = pltpu.roll(x, shift=S - 1, axis=1)

        # Column-validity masks (full lane width S, no ragged vregs).
        col = jax.lax.broadcasted_iota(jnp.int32, (1, S), 1)
        h_ok = col < (S - W)                  # wrap-around positions invalid
        w_ok = (col % W) != (W - 1)           # image-row boundary invalid

        if ragged:
            # Mask rows beyond the true BC extent (ragged tail block and/or
            # duplicate out-of-range block from the chunk split).
            row0 = (chunk * pl.num_programs(1) + step) * tbc
            rows = jax.lax.broadcasted_iota(jnp.int32, (tbc, 1), 0) + row0
            row_ok = rows < BC
            h_ok = jnp.logical_and(row_ok, h_ok)
            w_ok = jnp.logical_and(row_ok, w_ok)

        dh = jnp.where(h_ok, xh - x, 0.0)
        dw = jnp.where(w_ok, xw - x, 0.0)

        # Pure-VPU per-step reduction onto (8, S) accumulators.
        if groups == 1:
            h_acc[...] += dh * dh
            w_acc[...] += dw * dw
        else:
            h_acc[...] += jnp.sum((dh * dh).reshape(groups, 8, S), axis=0)
            w_acc[...] += jnp.sum((dw * dw).reshape(groups, 8, S), axis=0)

        @pl.when(step == pl.num_programs(1) - 1)
        def _finalize():
            h_ref[...] = jnp.sum(h_acc[...]).reshape(1, 1, 1)
            w_ref[...] = jnp.sum(w_acc[...]).reshape(1, 1, 1)

    return kernel


def tv_loss(x, tv_loss_weight=1.0, *, target_block_bytes=4 << 20):
    """Pallas TPU implementation of TVLoss.forward.  x: (B, C, H, W)."""
    B, C, H, W = x.shape
    BC = B * C
    S = H * W

    # Free, contiguous reshape to the lane-dense layout (BC, H*W).
    x2d = x.reshape(BC, S)

    # Rows per block: ~target_block_bytes, multiple of 8 sublanes, capped at
    # the (rounded-up) full BC extent.
    row_bytes = S * x2d.dtype.itemsize
    tbc = _round_up(max(1, target_block_bytes // row_bytes), 8)
    tbc = max(8, min(tbc, _round_up(BC, 8)))

    nblocks = _cdiv(BC, tbc)
    # Split across 2 chunks (v7x megacore) only when each chunk gets >= 2
    # reduction steps of real work; harmless on single-core v5e/v6e.
    n_chunks = 2 if nblocks >= 4 else 1
    steps = _cdiv(nblocks, n_chunks)

    # If the tiling does not exactly cover BC, mask rows in-kernel (no pad!).
    ragged = (n_chunks * steps * tbc) != BC

    kernel = _make_tv_kernel(H, W, tbc, BC, ragged)

    def _in_map(c, s):
        # Clamp so a duplicate tail block never opens a fully out-of-range
        # window; its contribution is zeroed by the in-kernel row mask.
        return (jnp.minimum(c * steps + s, nblocks - 1), 0)

    h_out, w_out = pl.pallas_call(
        kernel,
        out_shape=(
            jax.ShapeDtypeStruct((n_chunks, 1, 1), jnp.float32),
            jax.ShapeDtypeStruct((n_chunks, 1, 1), jnp.float32),
        ),
        grid_spec=pltpu.PrefetchScalarGridSpec(
            num_scalar_prefetch=0,
            grid=(n_chunks, steps),
            in_specs=[pl.BlockSpec((tbc, S), _in_map)],
            out_specs=(
                pl.BlockSpec((1, 1, 1), lambda c, s: (c, 0, 0)),
                pl.BlockSpec((1, 1, 1), lambda c, s: (c, 0, 0)),
            ),
            scratch_shapes=[
                pltpu.VMEM((8, S), jnp.float32),   # vertical-diff partials
                pltpu.VMEM((8, S), jnp.float32),   # horizontal-diff partials
            ],
        ),
        compiler_params=pltpu.CompilerParams(
            dimension_semantics=("parallel", "arbitrary"),
            vmem_limit_bytes=48 * 1024 * 1024,
        ),
    )(x2d)

    h_tv = jnp.sum(h_out)   # sum per-chunk partials
    w_tv = jnp.sum(w_out)

    count_h = C * (H - 1) * W
    count_w = C * H * (W - 1)
    return tv_loss_weight * 2.0 * (h_tv / count_h + w_tv / count_w) / B


def _tv_loss_ref(x, tv_loss_weight=1.0):
    # Pure-JAX reference mirroring the PyTorch module exactly.
    B, C, H, W = x.shape
    count_h = C * (H - 1) * W
    count_w = C * H * (W - 1)
    h_tv = jnp.sum((x[:, :, 1:, :] - x[:, :, : H - 1, :]) ** 2)
    w_tv = jnp.sum((x[:, :, :, 1:] - x[:, :, :, : W - 1]) ** 2)
    return tv_loss_weight * 2.0 * (h_tv / count_h + w_tv / count_w) / B


if __name__ == "__main__":
    key = jax.random.PRNGKey(0)
    B, C, H, W = 2, 4, 16, 16
    x = jax.random.normal(key, (B, C, H, W), dtype=jnp.float32)

    out = tv_loss(x, tv_loss_weight=1.0)
    out = jax.block_until_ready(out)

    ref = _tv_loss_ref(x, tv_loss_weight=1.0)
    assert jnp.allclose(out, ref, rtol=1e-5, atol=1e-5), (out, ref)

    print("KERNEL_OK")
</pallas_src>

<mosaic_0001>
module attributes {stable_mosaic.version = 11 : i64} {
  func.func @kernel(%arg0: i32, %arg1: i32, %arg2: memref<8x256xf32, #tpu.memory_space<vmem>>, %arg3: memref<1x1x1xf32, #tpu.memory_space<vmem>>, %arg4: memref<1x1x1xf32, #tpu.memory_space<vmem>>, %arg5: memref<8x256xf32, #tpu.memory_space<vmem>>, %arg6: memref<8x256xf32, #tpu.memory_space<vmem>>) attributes {dimension_semantics = [#tpu.dimension_semantics<parallel>, #tpu.dimension_semantics<arbitrary>], iteration_bounds = array<i64: 1, 1>, scalar_prefetch = 0 : i64, scratch_operands = 2 : i64, tpu.core_type = #tpu.core_type<tc>, window_params = [{transform_indices = @transform_0, window_bounds = array<i64: 8, 256>}, {transform_indices = @transform_1, window_bounds = array<i64: 1, 1, 1>}, {transform_indices = @transform_2, window_bounds = array<i64: 1, 1, 1>}]} {
    %c0_i32 = arith.constant 0 : i32
    %0 = arith.cmpi eq, %arg1, %c0_i32 : i32
    %1 = arith.extui %0 : i1 to i32
    %c0_i32_0 = arith.constant 0 : i32
    %2 = arith.cmpi ne, %1, %c0_i32_0 : i32
    scf.if %2 {
      %cst_18 = arith.constant 0.000000e+00 : f32
      %48 = vector.broadcast %cst_18 : f32 to vector<8x256xf32>
      %c0_19 = arith.constant 0 : index
      %c0_20 = arith.constant 0 : index
      %49 = vector.load %arg5[%c0_19, %c0_20] : memref<8x256xf32, #tpu.memory_space<vmem>>, vector<8x256xf32>
      tpu.vector_store %arg5[%c0_19, %c0_20], %48 {strides = array<i32>} : memref<8x256xf32, #tpu.memory_space<vmem>>, vector<8x256xf32>,
      %cst_21 = arith.constant 0.000000e+00 : f32
      %50 = vector.broadcast %cst_21 : f32 to vector<8x256xf32>
      %c0_22 = arith.constant 0 : index
      %c0_23 = arith.constant 0 : index
      %51 = vector.load %arg6[%c0_22, %c0_23] : memref<8x256xf32, #tpu.memory_space<vmem>>, vector<8x256xf32>
      tpu.vector_store %arg6[%c0_22, %c0_23], %50 {strides = array<i32>} : memref<8x256xf32, #tpu.memory_space<vmem>>, vector<8x256xf32>,
    } else {
    }
    %c0 = arith.constant 0 : index
    %c0_1 = arith.constant 0 : index
    %3 = vector.load %arg2[%c0, %c0_1] : memref<8x256xf32, #tpu.memory_space<vmem>>, vector<8x256xf32>
    %c240_i32 = arith.constant 240 : i32
    %4 = tpu.dynamic_rotate %3 by %c240_i32 dim 1 : vector<8x256xf32>, i32 -> vector<8x256xf32>
    %c255_i32 = arith.constant 255 : i32
    %5 = tpu.dynamic_rotate %3 by %c255_i32 dim 1 : vector<8x256xf32>, i32 -> vector<8x256xf32>
    %6 = tpu.iota {dimensions = array<i32: 1>} : vector<1x256xi32>
    %c240_i32_2 = arith.constant 240 : i32
    %7 = vector.broadcast %c240_i32_2 : i32 to vector<1x256xi32>
    %8 = arith.cmpi slt, %6, %7 : vector<1x256xi32>
    %c16_i32 = arith.constant 16 : i32
    %c0_i32_3 = arith.constant 0 : i32
    %9 = arith.cmpi eq, %c16_i32, %c0_i32_3 : i32
    %c1_i32 = arith.constant 1 : i32
    %10 = arith.select %9, %c1_i32, %c16_i32 : i32
    %11 = vector.broadcast %10 : i32 to vector<1x256xi32>
    %12 = arith.remsi %6, %11 : vector<1x256xi32>
    %c0_i32_4 = arith.constant 0 : i32
    %13 = vector.broadcast %c0_i32_4 : i32 to vector<1x256xi32>
    %14 = arith.cmpi ne, %12, %13 : vector<1x256xi32>
    %c0_i32_5 = arith.constant 0 : i32
    %15 = vector.broadcast %c0_i32_5 : i32 to vector<1x256xi32>
    %16 = arith.cmpi slt, %12, %15 : vector<1x256xi32>
    %c0_i32_6 = arith.constant 0 : i32
    %17 = arith.cmpi slt, %10, %c0_i32_6 : i32
    %18 = vector.broadcast %17 : i1 to vector<1x256xi1>
    %19 = vector.broadcast %18 : vector<1x256xi1> to vector<1x256xi1>
    %20 = arith.xori %16, %19 : vector<1x256xi1>
    %21 = arith.andi %20, %14 : vector<1x256xi1>
    %22 = vector.broadcast %10 : i32 to vector<1x256xi32>
    %23 = arith.addi %12, %22 : vector<1x256xi32>
    %24 = arith.select %21, %23, %12 : vector<1x256xi1>, vector<1x256xi32>
    %c15_i32 = arith.constant 15 : i32
    %25 = vector.broadcast %c15_i32 : i32 to vector<1x256xi32>
    %26 = arith.cmpi ne, %24, %25 : vector<1x256xi32>
    %27 = arith.subf %4, %3 : vector<8x256xf32>
    %cst = arith.constant 0.000000e+00 : f32
    %28 = vector.shape_cast %8 : vector<1x256xi1> to vector<1x256xi1>
    %29 = vector.broadcast %28 : vector<1x256xi1> to vector<8x256xi1>
    %30 = vector.broadcast %cst : f32 to vector<8x256xf32>
    %31 = arith.select %29, %27, %30 : vector<8x256xi1>, vector<8x256xf32>
    %32 = arith.subf %5, %3 : vector<8x256xf32>
    %cst_7 = arith.constant 0.000000e+00 : f32
    %33 = vector.shape_cast %26 : vector<1x256xi1> to vector<1x256xi1>
    %34 = vector.broadcast %33 : vector<1x256xi1> to vector<8x256xi1>
    %35 = vector.broadcast %cst_7 : f32 to vector<8x256xf32>
    %36 = arith.select %34, %32, %35 : vector<8x256xi1>, vector<8x256xf32>
    %c0_8 = arith.constant 0 : index
    %c0_9 = arith.constant 0 : index
    %37 = vector.load %arg5[%c0_8, %c0_9] : memref<8x256xf32, #tpu.memory_space<vmem>>, vector<8x256xf32>
    %38 = arith.mulf %31, %31 : vector<8x256xf32>
    %39 = arith.addf %37, %38 : vector<8x256xf32>
    %c0_10 = arith.constant 0 : index
    %c0_11 = arith.constant 0 : index
    %40 = vector.load %arg5[%c0_10, %c0_11] : memref<8x256xf32, #tpu.memory_space<vmem>>, vector<8x256xf32>
    tpu.vector_store %arg5[%c0_10, %c0_11], %39 {strides = array<i32>} : memref<8x256xf32, #tpu.memory_space<vmem>>, vector<8x256xf32>,
    %c0_12 = arith.constant 0 : index
    %c0_13 = arith.constant 0 : index
    %41 = vector.load %arg6[%c0_12, %c0_13] : memref<8x256xf32, #tpu.memory_space<vmem>>, vector<8x256xf32>
    %42 = arith.mulf %36, %36 : vector<8x256xf32>
    %43 = arith.addf %41, %42 : vector<8x256xf32>
    %c0_14 = arith.constant 0 : index
    %c0_15 = arith.constant 0 : index
    %44 = vector.load %arg6[%c0_14, %c0_15] : memref<8x256xf32, #tpu.memory_space<vmem>>, vector<8x256xf32>
    tpu.vector_store %arg6[%c0_14, %c0_15], %43 {strides = array<i32>} : memref<8x256xf32, #tpu.memory_space<vmem>>, vector<8x256xf32>,
    %c0_i32_16 = arith.constant 0 : i32
    %45 = arith.cmpi eq, %arg1, %c0_i32_16 : i32
    %46 = arith.extui %45 : i1 to i32
    %c0_i32_17 = arith.constant 0 : i32
    %47 = arith.cmpi ne, %46, %c0_i32_17 : i32
    scf.if %47 {
      %c0_18 = arith.constant 0 : index
      %c0_19 = arith.constant 0 : index
      %48 = vector.load %arg5[%c0_18, %c0_19] : memref<8x256xf32, #tpu.memory_space<vmem>>, vector<8x256xf32>
      %49 = vector.shape_cast %48 : vector<8x256xf32> to vector<1x8x256xf32>
      %cst_20 = arith.constant dense<0.000000e+00> : vector<1xf32>
      %50 = vector.multi_reduction <add>, %49, %cst_20 [1, 2] : vector<1x8x256xf32> to vector<1xf32>
      %51 = vector.shape_cast %50 : vector<1xf32> to vector<1x1x1xf32>
      %52 = vector.extract %51[0, 0, 0] : f32 from vector<1x1x1xf32>
      %53 = vector.broadcast %52 : f32 to vector<1x1x1xf32>
      %c0_21 = arith.constant 0 : index
      %c0_22 = arith.constant 0 : index
      %c0_23 = arith.constant 0 : index
      %54 = vector.load %arg3[%c0_21, %c0_22, %c0_23] : memref<1x1x1xf32, #tpu.memory_space<vmem>>, vector<1x1x1xf32>
      tpu.vector_store %arg3[%c0_21, %c0_22, %c0_23], %53 {strides = array<i32>} : memref<1x1x1xf32, #tpu.memory_space<vmem>>, vector<1x1x1xf32>,
      %c0_24 = arith.constant 0 : index
      %c0_25 = arith.constant 0 : index
      %55 = vector.load %arg6[%c0_24, %c0_25] : memref<8x256xf32, #tpu.memory_space<vmem>>, vector<8x256xf32>
      %56 = vector.shape_cast %55 : vector<8x256xf32> to vector<1x8x256xf32>
      %cst_26 = arith.constant dense<0.000000e+00> : vector<1xf32>
      %57 = vector.multi_reduction <add>, %56, %cst_26 [1, 2] : vector<1x8x256xf32> to vector<1xf32>
      %58 = vector.shape_cast %57 : vector<1xf32> to vector<1x1x1xf32>
      %59 = vector.extract %58[0, 0, 0] : f32 from vector<1x1x1xf32>
      %60 = vector.broadcast %59 : f32 to vector<1x1x1xf32>
      %c0_27 = arith.constant 0 : index
      %c0_28 = arith.constant 0 : index
      %c0_29 = arith.constant 0 : index
      %61 = vector.load %arg4[%c0_27, %c0_28, %c0_29] : memref<1x1x1xf32, #tpu.memory_space<vmem>>, vector<1x1x1xf32>
      tpu.vector_store %arg4[%c0_27, %c0_28, %c0_29], %60 {strides = array<i32>} : memref<1x1x1xf32, #tpu.memory_space<vmem>>, vector<1x1x1xf32>,
    } else {
    }
    return
  }
  func.func @transform_0(%arg0: i32, %arg1: i32) -> (i32, i32) {
    %c1_i32 = arith.constant 1 : i32
    %0 = arith.muli %arg0, %c1_i32 : i32
    %1 = arith.addi %0, %arg1 : i32
    %c0_i32 = arith.constant 0 : i32
    %2 = arith.minsi %1, %c0_i32 : i32
    %c0_i32_0 = arith.constant 0 : i32
    %c0_i32_1 = arith.constant 0 : i32
    return %2, %c0_i32_0 : i32, i32
  }
  func.func @transform_1(%arg0: i32, %arg1: i32) -> (i32, i32, i32) {
    %c0_i32 = arith.constant 0 : i32
    %c0_i32_0 = arith.constant 0 : i32
    %c0_i32_1 = arith.constant 0 : i32
    return %arg0, %c0_i32, %c0_i32_0 : i32, i32, i32
  }
  func.func @transform_2(%arg0: i32, %arg1: i32) -> (i32, i32, i32) {
    %c0_i32 = arith.constant 0 : i32
    %c0_i32_0 = arith.constant 0 : i32
    %c0_i32_1 = arith.constant 0 : i32
    return %arg0, %c0_i32, %c0_i32_0 : i32, i32, i32
  }
}

</mosaic_0001>

<bundles_post_ra>
// kernel: tpu_custom_call.1
= control target key start
LH: loop header
LB: loop body
LE: loop exit
PB: predicated region body
PF: predicated region fallthrough
CT: control target
= control target key end

     0   :  { %8 = vsyncpa [#allocation5], 0  ;;  %s330_s0 = inlined_call_operand.hbm [shape: f32[8,256], index: 0, kind: input, shape index: {}]   ;;  %s331_s1 = inlined_call_operand.hbm [shape: f32[1,1,1], index: 1, kind: output, shape index: {0}]   ;;  %s332_s2 = inlined_call_operand.hbm [shape: f32[1,1,1], index: 2, kind: output, shape index: {1}]  }
   0x1   :  { %9 = vsyncpa [#allocation6], 0 }
   0x2   :  { %10 = vsyncpa [#allocation9], 0  ;;  %s264_s9 = smov [#allocation4]   ;;  %s192_s13 = scalar_lea.hbm %s330_s0, 256 }
   0x3   :  { %s23_s10 = sshll.u32 %s264_s9, 4  ;;  %p193_p0 = scmp.ne.s32.totalorder %s330_s0, %s192_s13  ;;  %s24_s10 = int_to_ptr.vmem [resolvable:$true] %s23_s10 }
   0x4   :  { %p196_p1 = scmp.lt.u32.totalorder %s192_s13, %s330_s0 }
   0x6   :  { %p198_p2 = pnand %p196_p1, %p193_p0 }
   0x8   :  { %201 = shalt.err (!%p198_p2)
}
   0x9   :  { %s202_s18 = scalar_lea.vmem %s24_s10, 256  ;;  %p207_p4 = scmp.lt.s32.totalorder %s24_s10, %s24_s10 }
   0xa   :  { %p203_p3 = scmp.ne.s32.totalorder %s24_s10, %s202_s18  ;;  %p208_p5 = scmp.lt.s32.totalorder %s202_s18, %s202_s18 }
   0xc   :  { %p209_p6 = por %p208_p5, %p207_p4 }
   0xe   :  { %p210_p7 = pnand %p209_p6, %p203_p3 }
  0x10   :  { %213 = shalt.err (!%p210_p7)
}
  0x11   :  { %26 = dma.hbm_to_vmem [thread:$0]  %s330_s0, 256, %s24_s10, [#allocation5]  }
  0x12   :  { %258 = dma.done.wait [#allocation5], 256  }
  0x13   :  { %259 = vsyncadd [#allocation5], 4294967040  ;;  %v41_v0 = vld [vmem:[#allocation4] sm:$0xff]  ;;  %s265_s21 = smov 127   ;;  %s266_s22 = smov 112   ;;  %v42_v1 = vld [vmem:[#allocation4 + $0x8] sm:$0xff]  ;;  %v47_v2 = vlaneseq }
  0x14   :  { %52 = vrot.lane.b32.xlu1 %v41_v0, %s265_s21  ;;  %43 = vrot.lane.b32.xlu0 %v41_v0, %s266_s22  ;;  %s267_s0 = smov [#allocation7]   ;;  %s268_s24 = smov [#allocation8]   ;;  %vm136_vm5 = vcmask 0  }
  0x15   :  { %v48_v3 = vand.u32 127, %v47_v2  ;;  %s158_s23 = sshll.u32 %s267_s0, 4  ;;  %s168_s25 = sshll.u32 %s268_s24, 4  ;;  %s159_s23 = int_to_ptr.vmem [resolvable:$true] %s158_s23  ;;  %s296_s25 = int_to_ptr.vmem [resolvable:$true] %s168_s25 }
  0x16   :  { %s214_s28 = scalar_lea.vmem %s159_s23, 16  ;;  %s218_s29 = scalar_lea.vmem %s159_s23, 32 }
  0x17   :  { %v59_v4 = vadd.s32 128, %v48_v3  ;;  %v66_v7 = vand.u32 15, %v48_v3  ;;  %vm56_vm0 = vcmp.lt.s32.totalorder %v48_v3, 127  ;;  %vm49_vm1 = vcmp.lt.s32.totalorder %v48_v3, 112  ;;  %p215_p8 = scmp.ne.s32.totalorder %s159_s23, %s214_s28  ;;  %p219_p9 = scmp.lt.s32.totalorder %s159_s23, %s159_s23 }
  0x18   :  { %54 = vrot.lane.b32.xlu1 %v42_v1, %s265_s21  ;;  %45 = vrot.lane.b32.xlu0 %v42_v1, %s266_s22  ;;  %p220_p10 = scmp.lt.s32.totalorder %s218_s29, %s214_s28 }
  0x19   :  { %v73_v8 = vand.u32 15, %v59_v4  ;;  %vm86_vm2 = vcmp.ne.s32.totalorder %v66_v7, 15  ;;  %vm61_vm4 = vcmp.lt.s32.totalorder %v59_v4, 240 }
  0x1a   :  { %p221_p11 = por %p220_p10, %p219_p9 }
  0x1b   :  { %vm87_vm3 = vcmp.ne.s32.totalorder %v73_v8, 15 }
  0x1c   :  { %p222_p12 = pnand %p221_p11, %p215_p8 }
  0x86   :  { %v53_v5 = vpop.permute.xlu1 %52  ;;  %v44_v6 = vpop.permute.xlu0 %43 }
  0x8a   :  { %v55_v9 = vpop.permute.xlu1 %54  ;;  %v46_v10 = vpop.permute.xlu0 %45 }
  0x8b   :  { %v57_v11 = vsel %vm56_vm0, %v53_v5, %v55_v9  ;;  %v58_v12 = vsel %vm56_vm0, %v55_v9, %v53_v5  ;;  %v50_v13 = vsel %vm49_vm1, %v44_v6, %v46_v10  ;;  %v51_v14 = vsel %vm49_vm1, %v46_v10, %v44_v6 }
  0x8c   :  { %v96_v15 = vsub.f32 %v57_v11, %v41_v0  ;;  %v97_v16 = vsub.f32 %v58_v12, %v42_v1  ;;  %v88_v17 = vsub.f32 %v50_v13, %v41_v0  ;;  %v89_v18 = vsub.f32 %v51_v14, %v42_v1 }
  0x8e   :  { %v106_v19 = vmul.f32 %v88_v17, %v88_v17  ;;  %v102_v20 = vsel %vm86_vm2, %v96_v15, 0.0  ;;  %v103_v21 = vsel %vm87_vm3, %v97_v16, 0.0  ;;  %v95_v22 = vsel %vm61_vm4, %v89_v18, 0.0 }
  0x8f   :  { %v114_v23 = vmul.f32 %v102_v20, %v102_v20  ;;  %v115_v24 = vmul.f32 %v103_v21, %v103_v21  ;;  %v107_v25 = vmul.f32 %v95_v22, %v95_v22 }
  0x91   :  { %v140_v26 = vadd.f32 %v115_v24, %v114_v23  ;;  %v125_v27 = vadd.f32 %v107_v25, %v106_v19 }
  0x93   :  { %141 = vadd.xlane.f32.xlu1 %v140_v26  ;;  %126 = vadd.xlane.f32.xlu0 %v125_v27 }
 0x120   :  { %v142_v28 = vpop.xlane.xlu1 %141  ;;  %v127_v29 = vpop.xlane.xlu0 %126 }
 0x121   :  { %v143_v30 = vrot.slane %v142_v28, 4  ;;  %v128_v31 = vrot.slane %v127_v29, 4 }
 0x123   :  { %v144_v32 = vadd.f32 %v143_v30, %v142_v28  ;;  %v129_v33 = vadd.f32 %v128_v31, %v127_v29 }
 0x125   :  { %v145_v34 = vrot.slane %v144_v32, 2  ;;  %v130_v35 = vrot.slane %v129_v33, 2 }
 0x127   :  { %v146_v36 = vadd.f32 %v145_v34, %v144_v32  ;;  %v131_v37 = vadd.f32 %v130_v35, %v129_v33 }
 0x129   :  { %v132_v38 = vrot.slane %v131_v37, 1  ;;  %v147_v39 = vrot.slane %v146_v36, 1 }
 0x12b   :  { %v133_v40 = vadd.f32 %v132_v38, %v131_v37  ;;  %v148_v41 = vadd.f32 %v147_v39, %v146_v36 }
 0x12d   :  { %183 = vpush %v133_v40 }
 0x12e   :  { %185 = vpush %v148_v41 }
 0x15e   :  { %s184_s26 = spop %183 }
 0x15f   :  { %v135_v42 = vstv %s184_s26  ;;  %s186_s27 = spop %185 }
 0x160   :  { %v150_v43 = vstv %s186_s27  ;;  %137 = vst.msk [vmem:[#allocation7] sm:$0x1] %vm136_vm5, %v135_v42 }
 0x161   :  { %225 = shalt.err (!%p222_p12)
}
 0x162   :  { %s226_s4 = scalar_lea.hbm %s331_s1, 16 }
 0x163   :  { %p227_p13 = scmp.ne.s32.totalorder %s331_s1, %s226_s4  ;;  %p230_p0 = scmp.lt.u32.totalorder %s226_s4, %s331_s1 }
 0x165   :  { %p232_p1 = pnand %p230_p0, %p227_p13 }
 0x167   :  { %235 = shalt.err (!%p232_p1)
}
 0x168   :  { %161 = dma.vmem_to_hbm [thread:$0]  %s159_s23, 16, %s331_s1, [#allocation6]   ;;  %151 = vst.msk [vmem:[#allocation8] sm:$0x1] %vm136_vm5, %v150_v43 }
 0x169   :  { %s236_s11 = scalar_lea.vmem %s296_s25, 16  ;;  %s240_s12 = scalar_lea.vmem %s296_s25, 32 }
 0x16a   :  { %p237_p2 = scmp.ne.s32.totalorder %s296_s25, %s236_s11  ;;  %p241_p3 = scmp.lt.s32.totalorder %s296_s25, %s296_s25 }
 0x16b   :  { %p242_p4 = scmp.lt.s32.totalorder %s240_s12, %s236_s11 }
 0x16d   :  { %p243_p5 = por %p242_p4, %p241_p3 }
 0x16f   :  { %p244_p6 = pnand %p243_p5, %p237_p2 }
 0x171   :  { %247 = shalt.err (!%p244_p6)
}
 0x172   :  { %s248_s15 = scalar_lea.hbm %s332_s2, 16 }
 0x173   :  { %p249_p7 = scmp.ne.s32.totalorder %s332_s2, %s248_s15  ;;  %p252_p8 = scmp.lt.u32.totalorder %s248_s15, %s332_s2 }
 0x175   :  { %p254_p9 = pnand %p252_p8, %p249_p7 }
 0x177   :  { %257 = shalt.err (!%p254_p9)
}
 0x178   :  { %171 = dma.vmem_to_hbm [thread:$0]  %s296_s25, 16, %s332_s2, [#allocation9]  }
 0x179   :  { %260 = dma.done.wait [#allocation6], 16  }
 0x17a   :  { %261 = vsyncadd [#allocation6], 4294967280 }
 0x17b   :  { %262 = dma.done.wait [#allocation9], 16  }
 0x17c   :  { %263 = vsyncadd [#allocation9], 4294967280 }
 0x17d   :  { %178 = vsyncpa [#allocation5], 1 }
 0x17e   :  { %179 = vsyncpa [#allocation6], 1 }
 0x17f   :  { %180 = vsyncpa [#allocation9], 1 }

</bundles_post_ra>
